<compile_context>
chip_gen: v7x
topology: tpu7x:2x2x1
jax: 0.10.0
libtpu: 0.0.40
codegen_flags: <defaults>
</compile_context>

<pallas_src>
import functools
import math

import jax
import jax.numpy as jnp
from jax.experimental import pallas as pl
from jax.experimental.pallas import tpu as pltpu


def _round_up(n: int, m: int) -> int:
    return ((n + m - 1) // m) * m


def _pick_batch_tile(B: int, block_b: int) -> int:
    """Pick a batch tile: 8-aligned for tiny B, else largest 128-multiple with
    <= ~10% padded-batch waste (per-grid-step overhead is only ~0.35 us)."""
    if B <= 128:
        return max(8, _round_up(B, 8))
    limit = min(block_b, _round_up(B, 128))
    best = 128
    tb = 128
    while tb <= limit:
        if _round_up(B, tb) <= 1.1 * B:
            best = tb
        tb += 128
    return best


def simple_mlp_kernel(x_ref, w1_ref, b1_ref, w2_ref, b2_ref, o_ref):
    # Layer 1: Linear + ReLU. MXU matmul (bf16 or f32 inputs) with f32
    # accumulation; bias add / ReLU stay f32 on the VPU.
    h = jnp.dot(x_ref[...], w1_ref[...], preferred_element_type=jnp.float32)
    h = jnp.maximum(h + b1_ref[...].astype(jnp.float32), 0.0)
    # Layer 2: Linear.
    y = jnp.dot(h.astype(w2_ref.dtype), w2_ref[...],
                preferred_element_type=jnp.float32)
    o_ref[...] = (y + b2_ref[...].astype(jnp.float32)).astype(o_ref.dtype)


def simple_mlp_dropout_kernel(x_ref, w1_ref, b1_ref, w2_ref, b2_ref, mask_ref,
                              o_ref):
    # Training mode: mask_ref is a pre-scaled inverted-dropout keep mask
    # (0.0 or 1/(1-p)), streamed per batch tile, applied after ReLU.
    h = jnp.dot(x_ref[...], w1_ref[...], preferred_element_type=jnp.float32)
    h = jnp.maximum(h + b1_ref[...].astype(jnp.float32), 0.0)
    h = h * mask_ref[...]
    y = jnp.dot(h.astype(w2_ref.dtype), w2_ref[...],
                preferred_element_type=jnp.float32)
    o_ref[...] = (y + b2_ref[...].astype(jnp.float32)).astype(o_ref.dtype)


def prepare_simple_mlp_params(params, compute_dtype=jnp.bfloat16):
    """One-time weight preparation (pad + cast), hoisted out of the forward."""
    w1, b1, w2, b2 = params
    input_dim, hidden_dim = w1.shape
    output_dim = w2.shape[1]

    in_pad = _round_up(input_dim, 128)
    hidden_pad = _round_up(hidden_dim, 128)
    # Pad the output width only when it is wide enough that a lane-dense store
    # beats the inflated HBM writeback (tiny outputs stay unpadded -> masked vst).
    if output_dim % 128 == 0 or output_dim <= 32:
        out_pad = output_dim
    else:
        out_pad = _round_up(output_dim, 128)

    # Zero padding is numerically exact: padded x columns hit padded (zero) w1
    # rows; padded hidden columns feed padded (zero) w2 rows.
    w1p = jnp.pad(w1, ((0, in_pad - input_dim),
                       (0, hidden_pad - hidden_dim))).astype(compute_dtype)
    b1p = jnp.pad(b1.reshape(1, -1),
                  ((0, 0), (0, hidden_pad - hidden_dim))).astype(jnp.float32)
    w2p = jnp.pad(w2, ((0, hidden_pad - hidden_dim),
                       (0, out_pad - output_dim))).astype(compute_dtype)
    b2p = jnp.pad(b2.reshape(1, -1),
                  ((0, 0), (0, out_pad - output_dim))).astype(jnp.float32)

    return dict(w1=w1p, b1=b1p, w2=w2p, b2=b2p,
                input_dim=input_dim, hidden_dim=hidden_dim,
                output_dim=output_dim,
                in_pad=in_pad, hidden_pad=hidden_pad, out_pad=out_pad,
                compute_dtype=compute_dtype)


def simple_mlp_forward(x, prepared, *, dropout_p=0.5, training=False,
                       rng_key=None, dropout_mask=None, block_b=256,
                       single_buffer_weights=False):
    """x: [B, input_dim] f32 -> [B, output_dim] f32 (SimpleMLP forward)."""
    p = prepared
    B, input_dim = x.shape
    assert input_dim == p["input_dim"], "input_dim mismatch with prepared params"
    compute_dtype = p["compute_dtype"]
    in_pad, hidden_pad, out_pad = p["in_pad"], p["hidden_pad"], p["out_pad"]

    tb = _pick_batch_tile(B, block_b)
    B_pad = _round_up(B, tb)

    # Per-call preprocessing of x only: conditional pad (rows to B_pad, cols to
    # in_pad) and cast to the MXU compute dtype.
    xp = x
    pad_rows, pad_cols = B_pad - B, in_pad - input_dim
    if pad_rows or pad_cols:
        xp = jnp.pad(xp, ((0, pad_rows), (0, pad_cols)))
    if xp.dtype != compute_dtype:
        xp = xp.astype(compute_dtype)

    # Constant-index (VMEM-resident) weight specs. On v7x (64 MiB VMEM) pass
    # single_buffer_weights=True to halve their footprint via Buffered(1).
    if single_buffer_weights:
        def resident(shape):
            return pl.BlockSpec(shape, lambda i: (0, 0),
                                pipeline_mode=pl.Buffered(1))
    else:
        def resident(shape):
            return pl.BlockSpec(shape, lambda i: (0, 0))

    in_specs = [
        pl.BlockSpec((tb, in_pad), lambda i: (i, 0)),      # x: streamed
        resident((in_pad, hidden_pad)),                    # w1
        resident((1, hidden_pad)),                         # b1
        resident((hidden_pad, out_pad)),                   # w2
        resident((1, out_pad)),                            # b2
    ]
    inputs = [xp, p["w1"], p["b1"], p["w2"], p["b2"]]

    use_dropout = bool(training) and float(dropout_p) > 0.0
    if use_dropout:
        if dropout_p >= 1.0:
            # PyTorch semantics: p=1 drops everything (avoid 1/(1-p) = inf).
            mask = jnp.zeros((B_pad, hidden_pad), jnp.float32)
        else:
            if dropout_mask is None:
                if rng_key is None:
                    rng_key = jax.random.PRNGKey(0)
                dropout_mask = jax.random.bernoulli(
                    rng_key, 1.0 - float(dropout_p), (B, p["hidden_dim"]))
            scale = jnp.float32(1.0 / (1.0 - float(dropout_p)))
            mask = dropout_mask.astype(jnp.float32) * scale
            mask = jnp.pad(mask, ((0, B_pad - B),
                                  (0, hidden_pad - p["hidden_dim"])))
        in_specs.append(pl.BlockSpec((tb, hidden_pad), lambda i: (i, 0)))
        inputs.append(mask)
        kernel = simple_mlp_dropout_kernel
    else:
        kernel = simple_mlp_kernel

    flops = 2 * B_pad * (in_pad * hidden_pad + hidden_pad * out_pad)
    bytes_accessed = (xp.size * xp.dtype.itemsize
                      + B_pad * out_pad * 4
                      + p["w1"].size * p["w1"].dtype.itemsize
                      + p["b1"].size * 4
                      + p["w2"].size * p["w2"].dtype.itemsize
                      + p["b2"].size * 4)
    if use_dropout:
        bytes_accessed += B_pad * hidden_pad * 4

    out = pl.pallas_call(
        kernel,
        out_shape=jax.ShapeDtypeStruct((B_pad, out_pad), jnp.float32),
        grid=(B_pad // tb,),
        in_specs=in_specs,
        out_specs=pl.BlockSpec((tb, out_pad), lambda i: (i, 0)),
        compiler_params=pltpu.CompilerParams(
            dimension_semantics=("parallel",)),
        cost_estimate=pl.CostEstimate(flops=int(flops), transcendentals=0,
                                      bytes_accessed=int(bytes_accessed)),
    )(*inputs)

    if B_pad != B or out_pad != p["output_dim"]:
        out = out[:B, :p["output_dim"]]
    return out


def xavier_uniform(key, fan_in, fan_out):
    # Matches torch.nn.init.xavier_uniform_ on a [fan_out, fan_in] weight,
    # produced here directly in [fan_in, fan_out] (transposed) layout.
    limit = math.sqrt(6.0 / (fan_in + fan_out))
    return jax.random.uniform(key, (fan_in, fan_out), jnp.float32, -limit, limit)


def init_simple_mlp_params(key, input_dim, hidden_dim, output_dim):
    k1, k2 = jax.random.split(key)
    w1 = xavier_uniform(k1, input_dim, hidden_dim)
    b1 = jnp.zeros((hidden_dim,), jnp.float32)     # nn.init.zeros_(bias)
    w2 = xavier_uniform(k2, hidden_dim, output_dim)
    b2 = jnp.zeros((output_dim,), jnp.float32)
    return (w1, b1, w2, b2)


def simple_mlp_reference(x, params):
    # Pure-JAX reference of the PyTorch forward pass (eval mode: dropout = id).
    w1, b1, w2, b2 = params
    h = jnp.maximum(x @ w1 + b1, 0.0)
    return h @ w2 + b2


if __name__ == "__main__":
    key = jax.random.PRNGKey(0)
    kx, kp, kd = jax.random.split(key, 3)

    batch, input_dim, hidden_dim, output_dim = 2, 64, 32, 8
    x = jax.random.normal(kx, (batch, input_dim), jnp.float32)
    params = init_simple_mlp_params(kp, input_dim, hidden_dim, output_dim)
    w1, b1, w2, b2 = params
    ref = simple_mlp_reference(x, params)

    # 1) Eval mode, f32 compute: must match the pure-JAX reference tightly.
    prep_f32 = prepare_simple_mlp_params(params, compute_dtype=jnp.float32)
    out_f32 = jax.block_until_ready(
        simple_mlp_forward(x, prep_f32, dropout_p=0.5, training=False))
    assert out_f32.shape == (batch, output_dim)
    assert jnp.allclose(out_f32, ref, atol=1e-5, rtol=1e-5)

    # 2) Eval mode, default bf16 MXU inputs (f32 accumulation): loose tolerance.
    prep_bf16 = prepare_simple_mlp_params(params)   # compute_dtype=bf16 default
    out_bf16 = jax.block_until_ready(
        simple_mlp_forward(x, prep_bf16, dropout_p=0.5, training=False))
    assert out_bf16.shape == (batch, output_dim)
    assert jnp.allclose(out_bf16, ref, atol=5e-2, rtol=5e-2)

    # 3) Training mode, p=0.5: check exactly against a reference that uses the
    #    same keep mask (mask passed in explicitly so both sides agree).
    keep = jax.random.bernoulli(kd, 0.5, (batch, hidden_dim))
    out_tr = jax.block_until_ready(
        simple_mlp_forward(x, prep_f32, dropout_p=0.5, training=True,
                           dropout_mask=keep))
    h_ref = jnp.maximum(x @ w1 + b1, 0.0) * keep.astype(jnp.float32) * 2.0
    ref_tr = h_ref @ w2 + b2
    assert out_tr.shape == (batch, output_dim)
    assert jnp.allclose(out_tr, ref_tr, atol=1e-5, rtol=1e-5)

    # 4) Training mode, p=1.0: everything dropped -> output is just the bias.
    out_p1 = jax.block_until_ready(
        simple_mlp_forward(x, prep_f32, dropout_p=1.0, training=True))
    assert jnp.allclose(out_p1, jnp.broadcast_to(b2, (batch, output_dim)),
                        atol=1e-6)

    print("KERNEL_OK")
</pallas_src>

<mosaic_0001>
module attributes {stable_mosaic.version = 11 : i64} {
  func.func @simple_mlp_kernel(%arg0: i32, %arg1: memref<8x128xf32, #tpu.memory_space<vmem>>, %arg2: memref<128x128xf32, #tpu.memory_space<vmem>>, %arg3: memref<1x128xf32, #tpu.memory_space<vmem>>, %arg4: memref<128x8xf32, #tpu.memory_space<vmem>>, %arg5: memref<1x8xf32, #tpu.memory_space<vmem>>, %arg6: memref<8x8xf32, #tpu.memory_space<vmem>>) attributes {dimension_semantics = [#tpu.dimension_semantics<parallel>], iteration_bounds = array<i64: 1>, scalar_prefetch = 0 : i64, scratch_operands = 0 : i64, tpu.core_type = #tpu.core_type<tc>, window_params = [{transform_indices = @transform_0, window_bounds = array<i64: 8, 128>}, {pipeline_mode = #tpu.pipeline_mode<synchronous>, transform_indices = @transform_1, window_bounds = array<i64: 128, 128>}, {pipeline_mode = #tpu.pipeline_mode<synchronous>, transform_indices = @transform_2, window_bounds = array<i64: 1, 128>}, {pipeline_mode = #tpu.pipeline_mode<synchronous>, transform_indices = @transform_3, window_bounds = array<i64: 128, 8>}, {pipeline_mode = #tpu.pipeline_mode<synchronous>, transform_indices = @transform_4, window_bounds = array<i64: 1, 8>}, {transform_indices = @transform_5, window_bounds = array<i64: 8, 8>}]} {
    %c0 = arith.constant 0 : index
    %c0_0 = arith.constant 0 : index
    %0 = vector.load %arg1[%c0, %c0_0] : memref<8x128xf32, #tpu.memory_space<vmem>>, vector<8x128xf32>
    %c0_1 = arith.constant 0 : index
    %c0_2 = arith.constant 0 : index
    %1 = vector.load %arg2[%c0_1, %c0_2] : memref<128x128xf32, #tpu.memory_space<vmem>>, vector<128x128xf32>
    %cst = arith.constant dense<0.000000e+00> : vector<8x128xf32>
    %2 = tpu.matmul %0, %1, %cst {dimension_numbers = #tpu.dot_dimension_numbers<[1], [0], [0], [1], [0, 0, 1, 1], [], []>} : vector<8x128xf32>, vector<128x128xf32>, vector<8x128xf32> -> vector<8x128xf32>
    %c0_3 = arith.constant 0 : index
    %c0_4 = arith.constant 0 : index
    %3 = vector.load %arg3[%c0_3, %c0_4] : memref<1x128xf32, #tpu.memory_space<vmem>>, vector<1x128xf32>
    %4 = vector.broadcast %3 : vector<1x128xf32> to vector<8x128xf32>
    %5 = arith.addf %2, %4 : vector<8x128xf32>
    %cst_5 = arith.constant 0.000000e+00 : f32
    %6 = vector.broadcast %cst_5 : f32 to vector<8x128xf32>
    %7 = arith.maximumf %5, %6 : vector<8x128xf32>
    %c0_6 = arith.constant 0 : index
    %c0_7 = arith.constant 0 : index
    %8 = vector.load %arg4[%c0_6, %c0_7] : memref<128x8xf32, #tpu.memory_space<vmem>>, vector<128x8xf32>
    %cst_8 = arith.constant dense<0.000000e+00> : vector<8x8xf32>
    %9 = tpu.matmul %7, %8, %cst_8 {dimension_numbers = #tpu.dot_dimension_numbers<[1], [0], [0], [1], [0, 0, 1, 1], [], []>} : vector<8x128xf32>, vector<128x8xf32>, vector<8x8xf32> -> vector<8x8xf32>
    %c0_9 = arith.constant 0 : index
    %c0_10 = arith.constant 0 : index
    %10 = vector.load %arg5[%c0_9, %c0_10] : memref<1x8xf32, #tpu.memory_space<vmem>>, vector<1x8xf32>
    %11 = vector.broadcast %10 : vector<1x8xf32> to vector<8x8xf32>
    %12 = arith.addf %9, %11 : vector<8x8xf32>
    %c0_11 = arith.constant 0 : index
    %c0_12 = arith.constant 0 : index
    %13 = vector.load %arg6[%c0_11, %c0_12] : memref<8x8xf32, #tpu.memory_space<vmem>>, vector<8x8xf32>
    tpu.vector_store %arg6[%c0_11, %c0_12], %12 {strides = array<i32>} : memref<8x8xf32, #tpu.memory_space<vmem>>, vector<8x8xf32>,
    return
  }
  func.func @transform_0(%arg0: i32) -> (i32, i32) {
    %c0_i32 = arith.constant 0 : i32
    %c0_i32_0 = arith.constant 0 : i32
    return %arg0, %c0_i32 : i32, i32
  }
  func.func @transform_1(%arg0: i32) -> (i32, i32) {
    %c0_i32 = arith.constant 0 : i32
    %c0_i32_0 = arith.constant 0 : i32
    %c0_i32_1 = arith.constant 0 : i32
    return %c0_i32, %c0_i32_0 : i32, i32
  }
  func.func @transform_2(%arg0: i32) -> (i32, i32) {
    %c0_i32 = arith.constant 0 : i32
    %c0_i32_0 = arith.constant 0 : i32
    %c0_i32_1 = arith.constant 0 : i32
    return %c0_i32, %c0_i32_0 : i32, i32
  }
  func.func @transform_3(%arg0: i32) -> (i32, i32) {
    %c0_i32 = arith.constant 0 : i32
    %c0_i32_0 = arith.constant 0 : i32
    %c0_i32_1 = arith.constant 0 : i32
    return %c0_i32, %c0_i32_0 : i32, i32
  }
  func.func @transform_4(%arg0: i32) -> (i32, i32) {
    %c0_i32 = arith.constant 0 : i32
    %c0_i32_0 = arith.constant 0 : i32
    %c0_i32_1 = arith.constant 0 : i32
    return %c0_i32, %c0_i32_0 : i32, i32
  }
  func.func @transform_5(%arg0: i32) -> (i32, i32) {
    %c0_i32 = arith.constant 0 : i32
    %c0_i32_0 = arith.constant 0 : i32
    return %arg0, %c0_i32 : i32, i32
  }
}

</mosaic_0001>

<bundles_post_ra>
// kernel: tpu_custom_call.1
= control target key start
LH: loop header
LB: loop body
LE: loop exit
PB: predicated region body
PF: predicated region fallthrough
CT: control target
= control target key end

     0   :  { %v407_v3 = vmov 0.0|0.0   ;;  %vm408_vm0 = vmmov 0   ;;  %v409_v6 = vmov 0.0   ;;  %s574_s0 = inlined_call_operand.vmem [shape: f32[8,128], index: 0, kind: input, shape index: {}]   ;;  %s575_s1 = inlined_call_operand.vmem [shape: f32[128,128], index: 1, kind: input, shape index: {}]   ;;  %s576_s2 = inlined_call_operand.vmem [shape: f32[1,128], index: 2, kind: input, shape index: {}]   ;;  %s577_s3 = inlined_call_operand.vmem [shape: f32[128,8], index: 3, kind: input, shape index: {}]   ;;  %s578_s4 = inlined_call_operand.vmem [shape: f32[1,8], index: 4, kind: input, shape index: {}]   ;;  %s579_s5 = inlined_call_operand.hbm [shape: f32[8,8], index: 5, kind: output, shape index: {}]  }
   0x1   :  { %v22_v0 = vld [vmem:[%s575_s1] sm:$0xff]  ;;  %v23_v1 = vld [vmem:[%s575_s1 + $0x8] sm:$0xff]  ;;  %v24_v2 = vld [vmem:[%s575_s1 + $0x10] sm:$0xff]  ;;  %331 = vmatprep.subr.bf16.mxu0 %v407_v3  ;;  %293 = vmatprep.mubr.msk.f32.mxu0 %vm408_vm0, %v409_v6 }
   0x2   :  { %v332_v4 = vpack.c.bf16 %v23_v1, %v22_v0  ;;  %v25_v5 = vld [vmem:[%s575_s1 + $0x18] sm:$0xff]  ;;  %355 = vmatprep.subr.bf16.mxu1 %v407_v3  ;;  %328 = vmatprep.mubr.msk.f32.mxu1 %vm408_vm0, %v409_v6  ;;  %v26_v8 = vld [vmem:[%s575_s1 + $0x20] sm:$0xff]  ;;  %v27_v9 = vld [vmem:[%s575_s1 + $0x28] sm:$0xff] }
   0x3   :  { %v335_v7 = vpack.c.bf16 %v25_v5, %v24_v2  ;;  %v116_v10 = vld [vmem:[%s577_s3] sm:$0xff]  ;;  %v117_v11 = vld [vmem:[%s577_s3 + $0x8] sm:$0xff]  ;;  %v118_v12 = vld [vmem:[%s577_s3 + $0x10] sm:$0xff]  ;;  %v338_v14 = vpack.c.bf16 %v27_v9, %v26_v8 }
   0x4   :  { %333 = vmatpush3.bf16.msra.mxu0 %v332_v4  ;;  %v119_v13 = vld [vmem:[%s577_s3 + $0x18] sm:$0xff]  ;;  %v356_v15 = vpack.c.bf16 %v117_v11, %v116_v10  ;;  %v28_v16 = vld [vmem:[%s575_s1 + $0x30] sm:$0xff]  ;;  %v120_v19 = vld [vmem:[%s577_s3 + $0x20] sm:$0xff] }
   0x5   :  { %334 = vmatprep.subr.bf16.mxu0 %v407_v3  ;;  %v29_v17 = vld [vmem:[%s575_s1 + $0x38] sm:$0xff]  ;;  %v359_v18 = vpack.c.bf16 %v119_v13, %v118_v12  ;;  %v121_v20 = vld [vmem:[%s577_s3 + $0x28] sm:$0xff] }
   0x6   :  { %357 = vmatpush3.bf16.msra.mxu1 %v356_v15 }
   0x7   :  { %358 = vmatprep.subr.bf16.mxu1 %v407_v3 }
   0x8   :  { %336 = vmatpush3.bf16.msra.mxu0 %v335_v7 }
   0x9   :  { %337 = vmatprep.subr.bf16.mxu0 %v407_v3 }
   0xa   :  { %10 = vsyncpa [#allocation3], 0  ;;  %v341_v21 = vpack.c.bf16 %v29_v17, %v28_v16  ;;  %v30_v22 = vld [vmem:[%s575_s1 + $0x40] sm:$0xff]  ;;  %v31_v23 = vld [vmem:[%s575_s1 + $0x48] sm:$0xff]  ;;  %360 = vmatpush3.bf16.msra.mxu1 %v359_v18  ;;  %v362_v24 = vpack.c.bf16 %v121_v20, %v120_v19  ;;  %s410_s11 = smov [#allocation2]   ;;  %vm209_vm1 = vcmask 64512  }
   0xb   :  { %361 = vmatprep.subr.bf16.mxu1 %v407_v3  ;;  %v122_v25 = vld [vmem:[%s577_s3 + $0x30] sm:$0xff]  ;;  %v123_v26 = vld [vmem:[%s577_s3 + $0x38] sm:$0xff]  ;;  %v344_v27 = vpack.c.bf16 %v31_v23, %v30_v22  ;;  %v124_v31 = vld [vmem:[%s577_s3 + $0x40] sm:$0xff]  ;;  %s217_s12 = sshll.u32 %s410_s11, 4  ;;  %s218_s12 = int_to_ptr.vmem [resolvable:$true] %s217_s12 }
   0xc   :  { %339 = vmatpush3.bf16.msra.mxu0 %v338_v14  ;;  %v32_v28 = vld [vmem:[%s575_s1 + $0x50] sm:$0xff]  ;;  %v33_v29 = vld [vmem:[%s575_s1 + $0x58] sm:$0xff]  ;;  %v365_v30 = vpack.c.bf16 %v123_v26, %v122_v25  ;;  %v125_v32 = vld [vmem:[%s577_s3 + $0x48] sm:$0xff]  ;;  %p388_p1 = scmp.lt.s32.totalorder %s218_s12, %s218_s12 }
   0xd   :  { %340 = vmatprep.subr.bf16.mxu0 %v407_v3  ;;  %v347_v33 = vpack.c.bf16 %v33_v29, %v32_v28  ;;  %v34_v34 = vld [vmem:[%s575_s1 + $0x60] sm:$0xff]  ;;  %v35_v35 = vld [vmem:[%s575_s1 + $0x68] sm:$0xff]  ;;  %v368_v36 = vpack.c.bf16 %v125_v32, %v124_v31  ;;  %v126_v37 = vld [vmem:[%s577_s3 + $0x50] sm:$0xff] }
   0xe   :  { %363 = vmatpush3.bf16.msra.mxu1 %v362_v24  ;;  %v127_v38 = vld [vmem:[%s577_s3 + $0x58] sm:$0xff]  ;;  %v350_v39 = vpack.c.bf16 %v35_v35, %v34_v34  ;;  %v36_v40 = vld [vmem:[%s575_s1 + $0x70] sm:$0xff]  ;;  %v128_v43 = vld [vmem:[%s577_s3 + $0x60] sm:$0xff] }
   0xf   :  { %364 = vmatprep.subr.bf16.mxu1 %v407_v3  ;;  %v37_v41 = vld [vmem:[%s575_s1 + $0x78] sm:$0xff]  ;;  %v371_v42 = vpack.c.bf16 %v127_v38, %v126_v37  ;;  %v129_v44 = vld [vmem:[%s577_s3 + $0x68] sm:$0xff]  ;;  %v21_v47 = vld [vmem:[%s574_s0] sm:$0xff] }
  0x10   :  { %342 = vmatpush3.bf16.msra.mxu0 %v341_v21  ;;  %v353_v45 = vpack.c.bf16 %v37_v41, %v36_v40  ;;  %v374_v46 = vpack.c.bf16 %v129_v44, %v128_v43  ;;  %v130_v48 = vld [vmem:[%s577_s3 + $0x70] sm:$0xff]  ;;  %v131_v49 = vld [vmem:[%s577_s3 + $0x78] sm:$0xff]  ;;  %v225_v51 = vld [vmem:[%s576_s2] ss:$0 sm:$0xff]  ;;  %s383_s3 = scalar_lea.vmem %s218_s12, 128 }
  0x11   :  { %343 = vmatprep.subr.bf16.mxu0 %v407_v3  ;;  %v377_v50 = vpack.c.bf16 %v131_v49, %v130_v48  ;;  %v226_v56 = vld [vmem:[%s578_s4] ss:$0 sm:$0xff]  ;;  %p384_p0 = scmp.ne.s32.totalorder %s218_s12, %s383_s3  ;;  %p389_p2 = scmp.lt.s32.totalorder %s383_s3, %s383_s3 }
  0x12   :  { %366 = vmatpush3.bf16.msra.mxu1 %v365_v30 }
  0x13   :  { %367 = vmatprep.subr.bf16.mxu1 %v407_v3  ;;  %p390_p3 = por %p389_p2, %p388_p1 }
  0x14   :  { %345 = vmatpush3.bf16.msra.mxu0 %v344_v27 }
  0x15   :  { %346 = vmatprep.subr.bf16.mxu0 %v407_v3  ;;  %p391_p4 = pnand %p390_p3, %p384_p0 }
  0x16   :  { %369 = vmatpush3.bf16.msra.mxu1 %v368_v36 }
  0x17   :  { %370 = vmatprep.subr.bf16.mxu1 %v407_v3 }
  0x18   :  { %348 = vmatpush3.bf16.msra.mxu0 %v347_v33 }
  0x19   :  { %349 = vmatprep.subr.bf16.mxu0 %v407_v3 }
  0x1a   :  { %372 = vmatpush3.bf16.msra.mxu1 %v371_v42 }
  0x1b   :  { %373 = vmatprep.subr.bf16.mxu1 %v407_v3 }
  0x1c   :  { %351 = vmatpush3.bf16.msra.mxu0 %v350_v39 }
  0x1d   :  { %352 = vmatprep.subr.bf16.mxu0 %v407_v3 }
  0x1e   :  { %375 = vmatpush3.bf16.msra.mxu1 %v374_v46 }
  0x1f   :  { %376 = vmatprep.subr.bf16.mxu1 %v407_v3 }
  0x20   :  { %354 = vmatpush3.bf16.msra.mxu0 %v353_v45 }
  0x22   :  { %378 = vmatpush3.bf16.msra.mxu1 %v377_v50 }
  0x23   :  { %294 = vmatmul.mubr.f32.vlgmr.msra.gmra.mrb[0].mxu0 %v21_v47 }
  0xf6   :  { %v111_v52 = vpop.f32.mrb[0].mxu0 }
  0xf7   :  { %v112_v53 = vadd.f32 %v225_v51, %v111_v52  ;;  %v295_v54 = vpop.f32.mrb[1].mxu0 }
  0xf9   :  { %v115_v55 = vmax.f32 %v112_v53, 0.0 }
  0xfb   :  { %329 = vmatmul.mubr.f32.vlgmr.msra.gmra.mrb[0].mxu1 %v115_v55 }
 0x1ce   :  { %v205_v57 = vpop.f32.mrb[0].mxu1 }
 0x1cf   :  { %v206_v58 = vadd.f32 %v226_v56, %v205_v57  ;;  %v330_v59 = vpop.f32.mrb[1].mxu1 }
 0x1d1   :  { %210 = vst.msk [vmem:[#allocation2] sm:$0xff] %vm209_vm1, %v206_v58 }
 0x1d2   :  { %394 = shalt.err (!%p391_p4)
}
 0x1d3   :  { %s395_s14 = scalar_lea.hbm %s579_s5, 128 }
 0x1d4   :  { %p396_p5 = scmp.ne.s32.totalorder %s579_s5, %s395_s14  ;;  %p399_p6 = scmp.lt.u32.totalorder %s395_s14, %s579_s5 }
 0x1d6   :  { %p401_p7 = pnand %p399_p6, %p396_p5 }
 0x1d8   :  { %404 = shalt.err (!%p401_p7)
}
 0x1d9   :  { %220 = dma.vmem_to_hbm [thread:$0]  %s218_s12, 128, %s579_s5, [#allocation3]  }
 0x1da   :  { %405 = dma.done.wait [#allocation3], 128  }
 0x1db   :  { %406 = vsyncadd [#allocation3], 4294967168 }
 0x1dc   :  { %224 = vsyncpa [#allocation3], 1 }

</bundles_post_ra>
